<compile_context>
chip_gen: v7x
topology: tpu7x:2x2x1
jax: 0.10.0
libtpu: 0.0.40
codegen_flags: <defaults>
</compile_context>

<pallas_src>
import functools
import math

import jax
import jax.numpy as jnp
from jax.experimental import pallas as pl
from jax.experimental.pallas import tpu as pltpu


def _round_up(x, m):
    return ((x + m - 1) // m) * m


def _warp_kernel(rb_ref, coord_ref, qcol_ref, pair_ref, o_ref, *, C, W, HB, use_bf16):
    """One lane-dense tile of TQ output pixels (flattened i*W+j order).

    rb_ref:    (n_tiles,)   i32 SMEM  per-tile source-row band index (prefetched).
    coord_ref: (2, TQ)      f32 VMEM  [ix; iy] source coordinates for this tile.
    qcol_ref:  (W, 1)       f32 VMEM  constant column indices 0..W-1 (hoisted iota).
    pair_ref:  (C*W, 2*HB)  f32 VMEM  image rows [rb*HB, rb*HB + 2*HB) laid out as
                                      (channel*column, row); rows >= H are zeros.
    o_ref:     (C, TQ)      f32 VMEM  lane-dense output block.
    """
    t = pl.program_id(0)
    base = rb_ref[t] * HB                               # first source row in pair_ref

    ix = coord_ref[0:1, :]                              # (1, TQ) source column coord
    iy = coord_ref[1:2, :]                              # (1, TQ) source row coord

    # Vertical 2-tap weights, built only for the 2*HB band rows (band-sparse).
    # Zero padding is automatic: rows outside the band are either genuinely
    # zero-weighted or zero-valued in the padded image slab.
    K = 2 * HB
    p = jax.lax.broadcasted_iota(jnp.int32, (K, 1), 0) + base
    wy = jnp.maximum(0.0, 1.0 - jnp.abs(iy - p.astype(jnp.float32)))      # (K, TQ)

    # Vertical interpolation: single merged-channel MXU matmul (C*W,K)@(K,TQ).
    img = pair_ref[...]
    if use_bf16:
        vert = jnp.dot(img.astype(jnp.bfloat16), wy.astype(jnp.bfloat16),
                       preferred_element_type=jnp.float32)                # (C*W, TQ)
    else:
        vert = jnp.dot(img, wy, preferred_element_type=jnp.float32)       # (C*W, TQ)

    # Horizontal 2-tap weights + weighted sublane reduction over W (VPU only).
    wx = jnp.maximum(0.0, 1.0 - jnp.abs(ix - qcol_ref[...]))              # (W, TQ)
    rows = []
    for c in range(C):                                  # small static channel loop
        rows.append(jnp.sum(vert[c * W:(c + 1) * W, :] * wx, axis=0, keepdims=True))
    o_ref[...] = jnp.concatenate(rows, axis=0)          # (C, TQ)


def _pick_tile(HW, big_vmem):
    """Largest preferred lane-dense tile dividing HW (2048 only on 128-MiB-VMEM chips)."""
    prefs = (2048, 1024, 512, 256, 128) if big_vmem else (1024, 512, 256, 128)
    for tq in prefs:
        if HW % tq == 0:
            return tq
    # No clean divisor: pad the flattened pixel axis up to a multiple of 128.
    return min(prefs[0], _round_up(HW, 128))


def super_res_model_forward(img, flow, *, max_abs_flow_y=None, use_bf16=False):
    """img: (C, H, W) float ; flow: (H, W, 2) float -> (1, C, H, W) float32.

    max_abs_flow_y: optional static bound on |flow[..., 1]|; required to keep the
    vertical contraction band-sparse when `flow` is traced (under jit).  If the
    actual flow exceeds the bound, out-of-band taps are treated as out-of-image
    (zero padding).  With concrete inputs the band is derived exactly.
    """
    C, H, W = img.shape
    assert flow.shape == (H, W, 2), flow.shape
    HW = H * W
    img = img.astype(jnp.float32)
    flow = flow.astype(jnp.float32)

    # Per-arch tiling: v5e/v6e (128 MiB VMEM) take TQ up to 2048; v7x (64 MiB
    # per TensorCore) is capped at 1024.
    try:
        vmem_cap = int(pltpu.get_tpu_info().vmem_capacity_bytes)
    except Exception:  # conservative fallback if the query is unavailable
        vmem_cap = 64 << 20
    big_vmem = vmem_cap >= (100 << 20)
    TQ = _pick_tile(HW, big_vmem)
    HW_pad = _round_up(HW, TQ)
    n_tiles = HW_pad // TQ

    # Source coordinates with gridX/gridY and the -0.5 folded in host-side.
    gx = jnp.tile(jnp.arange(W, dtype=jnp.float32), H)
    gy = jnp.repeat(jnp.arange(H, dtype=jnp.float32), W)
    ix = gx - flow[..., 0].reshape(HW) - 0.5
    iy = gy - flow[..., 1].reshape(HW) - 0.5
    coords = jnp.stack([ix, iy], axis=0)                                  # (2, HW)
    if HW_pad != HW:
        coords = jnp.pad(coords, ((0, 0), (0, HW_pad - HW)), mode="edge")

    # Per-tile vertical band: first/last source rows touched by each tile.
    iy_tiles = coords[1].reshape(n_tiles, TQ)
    lo = jnp.clip(jnp.floor(jnp.min(iy_tiles, axis=1)), 0, H - 1).astype(jnp.int32)
    hi = jnp.clip(jnp.floor(jnp.max(iy_tiles, axis=1)) + 1.0, 0, H - 1).astype(jnp.int32)

    if max_abs_flow_y is not None:
        span = min((TQ - 1) // W + 3 + 2 * int(math.ceil(max_abs_flow_y)), H)
        HB = max(8, _round_up(span, 8))
    else:
        try:
            HB = max(8, _round_up(int(jnp.max(hi - lo)), 8))   # exact (eager calls)
        except (jax.errors.ConcretizationTypeError, TypeError):
            # TODO(synk): pass max_abs_flow_y under jit to keep the band narrow;
            # this fallback degrades to a dense (full-height) contraction.
            HB = max(8, _round_up(H, 8))

    n_pairs = -(-H // HB)                      # ceil(H / HB)
    H_pad = (n_pairs + 1) * HB                 # one extra zero slab for the 2nd half
    rb = jnp.clip(lo // HB, 0, n_pairs - 1).astype(jnp.int32)             # (n_tiles,)

    # Overlapping row-band pairs: pairs[s, c*W+w, k] = img[c, s*HB + k, w]
    # (rows >= H are zero, matching grid_sample's zero padding).
    rows = jnp.transpose(img, (1, 0, 2)).reshape(H, C * W)
    rows = jnp.pad(rows, ((0, H_pad - H), (0, 0)))
    gidx = jnp.arange(n_pairs)[:, None] * HB + jnp.arange(2 * HB)[None, :]
    pairs = jnp.transpose(rows[gidx], (0, 2, 1))                          # (n_pairs, C*W, 2*HB)

    qcol = jnp.arange(W, dtype=jnp.float32).reshape(W, 1)                 # hoisted column iota

    kernel = functools.partial(_warp_kernel, C=C, W=W, HB=HB, use_bf16=use_bf16)
    out = pl.pallas_call(
        kernel,
        out_shape=jax.ShapeDtypeStruct((C, HW_pad), jnp.float32),
        grid_spec=pltpu.PrefetchScalarGridSpec(
            num_scalar_prefetch=1,
            grid=(n_tiles,),
            in_specs=[
                pl.BlockSpec((2, TQ), lambda t, rb_ref: (0, t)),          # coords tile
                pl.BlockSpec((W, 1), lambda t, rb_ref: (0, 0)),           # constant column idx
                pl.BlockSpec((None, C * W, 2 * HB),
                             lambda t, rb_ref: (rb_ref[t], 0, 0)),        # image row band
            ],
            out_specs=pl.BlockSpec((C, TQ), lambda t, rb_ref: (0, t)),
        ),
        compiler_params=pltpu.CompilerParams(
            dimension_semantics=("parallel",),           # megacore sharding on v7x
            vmem_limit_bytes=(80 << 20) if big_vmem else (48 << 20)),
    )(rb, coords, qcol, pairs)

    return out[:, :HW].reshape(1, C, H, W)


def _reference_forward(img, flow):
    """Pure-JAX reference (explicit 4-tap bilinear gather) for verification."""
    C, H, W = img.shape
    u = flow[..., 0]
    v = flow[..., 1]
    gx = jnp.broadcast_to(jnp.arange(W, dtype=jnp.float32)[None, :], (H, W))
    gy = jnp.broadcast_to(jnp.arange(H, dtype=jnp.float32)[:, None], (H, W))
    xn = 2.0 * ((gx - u) / W - 0.5)
    yn = 2.0 * ((gy - v) / H - 0.5)
    ix = ((xn + 1.0) * W - 1.0) * 0.5
    iy = ((yn + 1.0) * H - 1.0) * 0.5
    x0 = jnp.floor(ix).astype(jnp.int32)
    y0 = jnp.floor(iy).astype(jnp.int32)
    x1, y1 = x0 + 1, y0 + 1
    wx1 = ix - x0.astype(jnp.float32)
    wy1 = iy - y0.astype(jnp.float32)

    def sample(yy, xx):
        valid = (yy >= 0) & (yy < H) & (xx >= 0) & (xx < W)
        yyc = jnp.clip(yy, 0, H - 1)
        xxc = jnp.clip(xx, 0, W - 1)
        vals = img[:, yyc, xxc]
        return jnp.where(valid[None], vals, 0.0)

    out = (sample(y0, x0) * ((1 - wy1) * (1 - wx1))[None]
           + sample(y0, x1) * ((1 - wy1) * wx1)[None]
           + sample(y1, x0) * (wy1 * (1 - wx1))[None]
           + sample(y1, x1) * (wy1 * wx1)[None])
    return out[None]


if __name__ == "__main__":
    key = jax.random.PRNGKey(0)
    # (C, H, W): single-tile, larger band, multi-tile / multi-pair, and a
    # non-divisible (padded) odd-shaped case.
    for (Cc, Hh, Ww) in ((4, 16, 16), (4, 32, 32), (4, 64, 64), (3, 24, 40)):
        key, k_img, k_flow = jax.random.split(key, 3)
        img = jax.random.normal(k_img, (Cc, Hh, Ww), dtype=jnp.float32)
        flow = 2.0 * jax.random.normal(k_flow, (Hh, Ww, 2), dtype=jnp.float32)

        out = jax.block_until_ready(super_res_model_forward(img, flow))
        ref = _reference_forward(img, flow)
        assert out.shape == (1, Cc, Hh, Ww)
        err = float(jnp.max(jnp.abs(out - ref)))
        assert err < 1e-4, err

    # Optional bf16-MXU path (faster; ~1e-3 relative operand quantization).
    img = jax.random.normal(jax.random.PRNGKey(1), (4, 32, 32), dtype=jnp.float32)
    flow = 2.0 * jax.random.normal(jax.random.PRNGKey(2), (32, 32, 2), dtype=jnp.float32)
    out16 = jax.block_until_ready(super_res_model_forward(img, flow, use_bf16=True))
    ref16 = _reference_forward(img, flow)
    assert float(jnp.max(jnp.abs(out16 - ref16))) < 1e-1

    print("KERNEL_OK")
</pallas_src>

<mosaic_0001>
module attributes {stable_mosaic.version = 11 : i64} {
  func.func @_warp_kernel(%arg0: i32, %arg1: memref<1xi32, #tpu.memory_space<smem>>, %arg2: memref<2x256xf32, #tpu.memory_space<vmem>>, %arg3: memref<16x1xf32, #tpu.memory_space<vmem>>, %arg4: memref<1x64x32xf32, #tpu.memory_space<vmem>>, %arg5: memref<4x256xf32, #tpu.memory_space<vmem>>) attributes {dimension_semantics = [#tpu.dimension_semantics<parallel>], iteration_bounds = array<i64: 1>, scalar_prefetch = 1 : i64, scratch_operands = 0 : i64, tpu.core_type = #tpu.core_type<tc>, window_params = [{transform_indices = @transform_0, window_bounds = array<i64: 2, 256>}, {pipeline_mode = #tpu.pipeline_mode<synchronous>, transform_indices = @transform_1, window_bounds = array<i64: 16, 1>}, {transform_indices = @transform_2, window_bounds = array<i64: 1, 64, 32>}, {transform_indices = @transform_3, window_bounds = array<i64: 4, 256>}]} {
    %0 = arith.index_cast %arg0 : i32 to index
    %1 = memref.load %arg1[%0] : memref<1xi32, #tpu.memory_space<smem>>
    %c16_i32 = arith.constant 16 : i32
    %2 = arith.muli %1, %c16_i32 : i32
    %c0 = arith.constant 0 : index
    %c0_0 = arith.constant 0 : index
    %3 = vector.load %arg2[%c0, %c0_0] : memref<2x256xf32, #tpu.memory_space<vmem>>, vector<1x256xf32>
    %c1 = arith.constant 1 : index
    %c0_1 = arith.constant 0 : index
    %4 = vector.load %arg2[%c1, %c0_1] : memref<2x256xf32, #tpu.memory_space<vmem>>, vector<1x256xf32>
    %5 = tpu.iota {dimensions = array<i32: 0>} : vector<32x1xi32>
    %6 = vector.broadcast %2 : i32 to vector<32x1xi32>
    %7 = arith.addi %5, %6 : vector<32x1xi32>
    %8 = arith.sitofp %7 : vector<32x1xi32> to vector<32x1xf32>
    %9 = vector.broadcast %4 : vector<1x256xf32> to vector<32x256xf32>
    %10 = vector.broadcast %8 : vector<32x1xf32> to vector<32x256xf32>
    %11 = arith.subf %9, %10 : vector<32x256xf32>
    %12 = math.absf %11 : vector<32x256xf32>
    %cst = arith.constant 1.000000e+00 : f32
    %13 = vector.broadcast %cst : f32 to vector<32x256xf32>
    %14 = arith.subf %13, %12 : vector<32x256xf32>
    %cst_2 = arith.constant 0.000000e+00 : f32
    %15 = vector.broadcast %cst_2 : f32 to vector<32x256xf32>
    %16 = arith.maximumf %15, %14 : vector<32x256xf32>
    %c0_3 = arith.constant 0 : index
    %c0_4 = arith.constant 0 : index
    %c0_5 = arith.constant 0 : index
    %17 = vector.load %arg4[%c0_3, %c0_4, %c0_5] : memref<1x64x32xf32, #tpu.memory_space<vmem>>, vector<1x64x32xf32>
    %18 = vector.shape_cast %17 : vector<1x64x32xf32> to vector<64x32xf32>
    %cst_6 = arith.constant dense<0.000000e+00> : vector<64x256xf32>
    %19 = tpu.matmul %18, %16, %cst_6 {dimension_numbers = #tpu.dot_dimension_numbers<[1], [0], [0], [1], [0, 0, 1, 1], [], []>} : vector<64x32xf32>, vector<32x256xf32>, vector<64x256xf32> -> vector<64x256xf32>
    %c0_7 = arith.constant 0 : index
    %c0_8 = arith.constant 0 : index
    %20 = vector.load %arg3[%c0_7, %c0_8] : memref<16x1xf32, #tpu.memory_space<vmem>>, vector<16x1xf32>
    %21 = vector.broadcast %3 : vector<1x256xf32> to vector<16x256xf32>
    %22 = vector.broadcast %20 : vector<16x1xf32> to vector<16x256xf32>
    %23 = arith.subf %21, %22 : vector<16x256xf32>
    %24 = math.absf %23 : vector<16x256xf32>
    %cst_9 = arith.constant 1.000000e+00 : f32
    %25 = vector.broadcast %cst_9 : f32 to vector<16x256xf32>
    %26 = arith.subf %25, %24 : vector<16x256xf32>
    %cst_10 = arith.constant 0.000000e+00 : f32
    %27 = vector.broadcast %cst_10 : f32 to vector<16x256xf32>
    %28 = arith.maximumf %27, %26 : vector<16x256xf32>
    %29 = vector.extract_strided_slice %19 {offsets = [0, 0], sizes = [16, 256], strides = [1, 1]} : vector<64x256xf32> to vector<16x256xf32>
    %30 = arith.mulf %29, %28 : vector<16x256xf32>
    %cst_11 = arith.constant dense<0.000000e+00> : vector<256xf32>
    %31 = vector.multi_reduction <add>, %30, %cst_11 [0] : vector<16x256xf32> to vector<256xf32>
    %32 = vector.shape_cast %31 : vector<256xf32> to vector<1x256xf32>
    %33 = vector.extract_strided_slice %19 {offsets = [16, 0], sizes = [16, 256], strides = [1, 1]} : vector<64x256xf32> to vector<16x256xf32>
    %34 = arith.mulf %33, %28 : vector<16x256xf32>
    %cst_12 = arith.constant dense<0.000000e+00> : vector<256xf32>
    %35 = vector.multi_reduction <add>, %34, %cst_12 [0] : vector<16x256xf32> to vector<256xf32>
    %36 = vector.shape_cast %35 : vector<256xf32> to vector<1x256xf32>
    %37 = vector.extract_strided_slice %19 {offsets = [32, 0], sizes = [16, 256], strides = [1, 1]} : vector<64x256xf32> to vector<16x256xf32>
    %38 = arith.mulf %37, %28 : vector<16x256xf32>
    %cst_13 = arith.constant dense<0.000000e+00> : vector<256xf32>
    %39 = vector.multi_reduction <add>, %38, %cst_13 [0] : vector<16x256xf32> to vector<256xf32>
    %40 = vector.shape_cast %39 : vector<256xf32> to vector<1x256xf32>
    %41 = vector.extract_strided_slice %19 {offsets = [48, 0], sizes = [16, 256], strides = [1, 1]} : vector<64x256xf32> to vector<16x256xf32>
    %42 = arith.mulf %41, %28 : vector<16x256xf32>
    %cst_14 = arith.constant dense<0.000000e+00> : vector<256xf32>
    %43 = vector.multi_reduction <add>, %42, %cst_14 [0] : vector<16x256xf32> to vector<256xf32>
    %44 = vector.shape_cast %43 : vector<256xf32> to vector<1x256xf32>
    %45 = tpu.concatenate %32, %36, %40, %44 in 0 : vector<1x256xf32>, vector<1x256xf32>, vector<1x256xf32>, vector<1x256xf32> -> vector<4x256xf32>
    %c0_15 = arith.constant 0 : index
    %c0_16 = arith.constant 0 : index
    %46 = vector.load %arg5[%c0_15, %c0_16] : memref<4x256xf32, #tpu.memory_space<vmem>>, vector<4x256xf32>
    tpu.vector_store %arg5[%c0_15, %c0_16], %45 {strides = array<i32>} : memref<4x256xf32, #tpu.memory_space<vmem>>, vector<4x256xf32>,
    return
  }
  func.func @transform_0(%arg0: i32, %arg1: memref<1xi32, #tpu.memory_space<smem>>) -> (i32, i32) {
    %c0_i32 = arith.constant 0 : i32
    %c0_i32_0 = arith.constant 0 : i32
    return %c0_i32, %arg0 : i32, i32
  }
  func.func @transform_1(%arg0: i32, %arg1: memref<1xi32, #tpu.memory_space<smem>>) -> (i32, i32) {
    %c0_i32 = arith.constant 0 : i32
    %c0_i32_0 = arith.constant 0 : i32
    %c0_i32_1 = arith.constant 0 : i32
    return %c0_i32, %c0_i32_0 : i32, i32
  }
  func.func @transform_2(%arg0: i32, %arg1: memref<1xi32, #tpu.memory_space<smem>>) -> (i32, i32, i32) {
    %0 = arith.index_cast %arg0 : i32 to index
    %1 = memref.load %arg1[%0] : memref<1xi32, #tpu.memory_space<smem>>
    %c0_i32 = arith.constant 0 : i32
    %c0_i32_0 = arith.constant 0 : i32
    %c0_i32_1 = arith.constant 0 : i32
    return %1, %c0_i32, %c0_i32_0 : i32, i32, i32
  }
  func.func @transform_3(%arg0: i32, %arg1: memref<1xi32, #tpu.memory_space<smem>>) -> (i32, i32) {
    %c0_i32 = arith.constant 0 : i32
    %c0_i32_0 = arith.constant 0 : i32
    return %c0_i32, %arg0 : i32, i32
  }
}

</mosaic_0001>

<bundles_post_ra>
// kernel: tpu_custom_call.1
= control target key start
LH: loop header
LB: loop body
LE: loop exit
PB: predicated region body
PF: predicated region fallthrough
CT: control target
= control target key end

     0   :  { %v42_v0 = vlaneseq  ;;  %v443_v2 = vmov 0.0   ;;  %s543_s0 = inlined_call_operand.<no memory space> [shape: s32[1], index: 0, kind: input, shape index: {}]   ;;  %s544_s1 = inlined_call_operand.vmem [shape: f32[2,256], index: 1, kind: input, shape index: {}]   ;;  %s545_s2 = inlined_call_operand.vmem [shape: f32[16,1], index: 2, kind: input, shape index: {}]   ;;  %s546_s3 = inlined_call_operand.vmem [shape: f32[1,64,32], index: 3, kind: input, shape index: {}]   ;;  %s547_s4 = inlined_call_operand.hbm [shape: f32[4,256], index: 4, kind: output, shape index: {}]  }
   0x1   :  { %s392_s17 = sshll.u32 %s543_s0, 4  ;;  %196 = vmatprep.mubr.f32.mxu0 %v443_v2  ;;  %220 = vmatprep.mubr.f32.mxu1 %v443_v2  ;;  %v245_v3 = vld [vmem:[%s545_s2] sm:$0xff] }
   0x2   :  { %v47_v1 = vstv %s392_s17 }
   0x3   :  { %10 = vsyncpa [#allocation5], 0  ;;  %v479_v4 = vshrl.u32 %v42_v0, 7  ;;  %v444_v5 = vmov 0   ;;  %v246_v11 = vld [vmem:[%s545_s2 + $0x8] sm:$0xff]  ;;  %p31_p0 = scmp.lt.s32.totalorder %s543_s0, 0 }
   0x4   :  { %418 = vset.pattern.permute.xlu0 %v444_v5  ;;  %v393_v6 = vld [vmem:[%s544_s1 + $0x1] ss:$2 sm:$0x3]  ;;  %vm107_vm0 = vcmask 261120   ;;  %vm356_vm1 = vcmask 1040384   ;;  %vm359_vm2 = vcmask 1041408  }
   0x5   :  { %260 = vperm.xlu0 %418, %v245_v3   ;;  %v44_v7 = vadd.s32 8, %v479_v4  ;;  %v48_v8 = vadd.s32 %v47_v1, %v479_v4  ;;  %v63_v9 = vsub.s32 1, %v479_v4  ;;  %v59_v10 = vsub.s32 0, %v479_v4  ;;  %s549_s0 = smov (!%p31_p0, %s543_s0), 0 }
   0x6   :  { %v45_v12 = vadd.s32 16, %v479_v4  ;;  %v46_v13 = vadd.s32 24, %v479_v4  ;;  %s402_s29 = sshll.u32 %s549_s0, 6  ;;  %v39_v5 = vld [vmem:[%s544_s1] ss:$2 sm:$0x3] }
   0x7   :  { %v49_v14 = vadd.s32 %v47_v1, %v44_v7  ;;  %v52_v15 = vcvt.s32.f32 %v48_v8  ;;  %v64_v16 = vrot.slane %v393_v6, %v63_v9  ;;  %v60_v17 = vrot.slane %v393_v6, %v59_v10  ;;  %s35_s6 = scalar_lea.vmem %s546_s3, %s402_s29  ;;  %s445_s1 = smov [#allocation4]  }
   0x8   :  { %v50_v18 = vadd.s32 %v47_v1, %v45_v12  ;;  %v51_v19 = vadd.s32 %v47_v1, %v46_v13  ;;  %v99_v59 = vld [vmem:[%s35_s6] sm:$0xff]  ;;  %v100_v61 = vld [vmem:[%s35_s6 + $0x8] sm:$0xff]  ;;  %v101_v63 = vld [vmem:[%s35_s6 + $0x10] sm:$0xff]  ;;  %v251_v7 = vrot.slane %v39_v5, %v59_v10  ;;  %v255_v8 = vrot.slane %v39_v5, %v63_v9  ;;  %s376_s7 = sshll.u32 %s445_s1, 4  ;;  %s377_s7 = int_to_ptr.vmem [resolvable:$true] %s376_s7 }
   0x9   :  { %265 = vperm.xlu0 %418, %v246_v11   ;;  %v53_v20 = vcvt.s32.f32 %v49_v14  ;;  %v68_v21 = vsub.f32 %v64_v16, %v52_v15  ;;  %v67_v22 = vsub.f32 %v60_v17, %v52_v15  ;;  %v103_v60 = vld [vmem:[%s35_s6 + $0x20] sm:$0xff]  ;;  %v104_v62 = vld [vmem:[%s35_s6 + $0x28] sm:$0xff]  ;;  %v105_v0 = vld [vmem:[%s35_s6 + $0x30] sm:$0xff]  ;;  %vm362_vm3 = vcmask 1042432   ;;  %s419_s8 = scalar_lea.vmem %s377_s7, 128  ;;  %p424_p2 = scmp.lt.s32.totalorder %s377_s7, %s377_s7 }
   0xa   :  { %v54_v23 = vcvt.s32.f32 %v50_v18  ;;  %v55_v24 = vcvt.s32.f32 %v51_v19  ;;  %v102_v1 = vld [vmem:[%s35_s6 + $0x18] sm:$0xff]  ;;  %p420_p1 = scmp.ne.s32.totalorder %s377_s7, %s419_s8  ;;  %p425_p3 = scmp.lt.s32.totalorder %s419_s8, %s419_s8 }
   0xb   :  { %v70_v25 = vsub.f32 %v64_v16, %v53_v20  ;;  %v76_v26 = vand.u32 2147483647, %v68_v21  ;;  %v69_v27 = vsub.f32 %v60_v17, %v53_v20  ;;  %v75_v28 = vand.u32 2147483647, %v67_v22  ;;  %v106_v3 = vld [vmem:[%s35_s6 + $0x38] sm:$0xff] }
   0xc   :  { %v72_v29 = vsub.f32 %v64_v16, %v54_v23  ;;  %v74_v30 = vsub.f32 %v64_v16, %v55_v24  ;;  %v71_v31 = vsub.f32 %v60_v17, %v54_v23  ;;  %v73_v32 = vsub.f32 %v60_v17, %v55_v24  ;;  %p426_p4 = por %p425_p3, %p424_p2 }
   0xd   :  { %v78_v33 = vand.u32 2147483647, %v70_v25  ;;  %v84_v34 = vsub.f32 1.0, %v76_v26  ;;  %v77_v35 = vand.u32 2147483647, %v69_v27  ;;  %v83_v36 = vsub.f32 1.0, %v75_v28 }
   0xe   :  { %v80_v37 = vand.u32 2147483647, %v72_v29  ;;  %v82_v38 = vand.u32 2147483647, %v74_v30  ;;  %v79_v39 = vand.u32 2147483647, %v71_v31  ;;  %p427_p5 = pnand %p426_p4, %p420_p1 }
   0xf   :  { %v86_v40 = vsub.f32 1.0, %v78_v33  ;;  %v92_v41 = vmax.f32 %v84_v34, 0.0  ;;  %v85_v42 = vsub.f32 1.0, %v77_v35  ;;  %v91_v43 = vmax.f32 %v83_v36, 0.0 }
  0x10   :  { %v88_v44 = vsub.f32 1.0, %v80_v37  ;;  %v90_v45 = vsub.f32 1.0, %v82_v38  ;;  %v81_v46 = vand.u32 2147483647, %v73_v32  ;;  %v87_v47 = vsub.f32 1.0, %v79_v39 }
  0x11   :  { %v94_v48 = vmax.f32 %v86_v40, 0.0  ;;  %v93_v49 = vmax.f32 %v85_v42, 0.0 }
  0x12   :  { %v96_v50 = vmax.f32 %v88_v44, 0.0  ;;  %v98_v51 = vmax.f32 %v90_v45, 0.0  ;;  %v89_v52 = vsub.f32 1.0, %v81_v46  ;;  %v95_v53 = vmax.f32 %v87_v47, 0.0 }
  0x13   :  { %v403_v54 = vpack.c.bf16 %v94_v48, %v92_v41  ;;  %v405_v55 = vpack.c.bf16 %v93_v49, %v91_v43 }
  0x14   :  { %v407_v56 = vpack.c.bf16 %v98_v51, %v96_v50  ;;  %v97_v57 = vmax.f32 %v89_v52, 0.0 }
  0x15   :  { %404 = vmatprep.subr.bf16.mxu0 %v403_v54  ;;  %411 = vmatprep.subr.bf16.mxu1 %v403_v54 }
  0x16   :  { %406 = vmatpush1.bf16.msra.mxu0 %v405_v55  ;;  %413 = vmatpush1.bf16.msra.mxu1 %v405_v55  ;;  %v409_v58 = vpack.c.bf16 %v97_v57, %v95_v53 }
  0x17   :  { %408 = vmatprep.subr.bf16.mxu0 %v407_v56  ;;  %412 = vmatprep.subr.bf16.mxu1 %v407_v56 }
  0x1a   :  { %410 = vmatpush1.bf16.msra.mxu0 %v409_v58  ;;  %414 = vmatpush1.bf16.msra.mxu1 %v409_v58 }
  0x1d   :  { %394 = vmatmul.mubr.msk.f32.vlgmr.msra.gmra.mrb[0].mxu0 %vm107_vm0, %v99_v59  ;;  %398 = vmatmul.mubr.msk.f32.vlgmr.msra.gmra.mrb[0].mxu1 %vm107_vm0, %v103_v60 }
  0x1e   :  { %202 = vmatprep.mubr.f32.mxu0 %v443_v2  ;;  %226 = vmatprep.mubr.f32.mxu1 %v443_v2 }
  0x21   :  { %395 = vmatmul.mubr.msk.f32.gmra.mrb[2].mxu0 %vm107_vm0, %v100_v61  ;;  %399 = vmatmul.mubr.msk.f32.gmra.mrb[2].mxu1 %vm107_vm0, %v104_v62 }
  0x22   :  { %208 = vmatprep.mubr.f32.mxu0 %v443_v2  ;;  %232 = vmatprep.mubr.f32.mxu1 %v443_v2 }
  0x25   :  { %396 = vmatmul.mubr.msk.f32.gmra.mrb[4].mxu0 %vm107_vm0, %v101_v63  ;;  %400 = vmatmul.mubr.msk.f32.gmra.mrb[4].mxu1 %vm107_vm0, %v105_v0 }
  0x26   :  { %214 = vmatprep.mubr.f32.mxu0 %v443_v2  ;;  %238 = vmatprep.mubr.f32.mxu1 %v443_v2 }
  0x29   :  { %397 = vmatmul.mubr.msk.f32.gmra.mrb[6].mxu0 %vm107_vm0, %v102_v1  ;;  %401 = vmatmul.mubr.msk.f32.gmra.mrb[6].mxu1 %vm107_vm0, %v106_v3 }
  0x84   :  { %v261_v6 = vpop.permute.xlu0 %260 }
  0x85   :  { %v268_v11 = vsub.f32 %v251_v7, %v261_v6  ;;  %v269_v12 = vsub.f32 %v255_v8, %v261_v6 }
  0x87   :  { %v272_v13 = vand.u32 2147483647, %v268_v11  ;;  %v273_v15 = vand.u32 2147483647, %v269_v12 }
  0x88   :  { %v266_v2 = vpop.permute.xlu0 %265 }
  0x89   :  { %v270_v14 = vsub.f32 %v251_v7, %v266_v2  ;;  %v271_v16 = vsub.f32 %v255_v8, %v266_v2  ;;  %v276_v17 = vsub.f32 1.0, %v272_v13  ;;  %v277_v19 = vsub.f32 1.0, %v273_v15 }
  0x8b   :  { %v274_v18 = vand.u32 2147483647, %v270_v14  ;;  %v275_v20 = vand.u32 2147483647, %v271_v16  ;;  %v280_v21 = vmax.f32 %v276_v17, 0.0  ;;  %v281_v23 = vmax.f32 %v277_v19, 0.0 }
  0x8d   :  { %v278_v22 = vsub.f32 1.0, %v274_v18  ;;  %v279_v24 = vsub.f32 1.0, %v275_v20 }
  0x8f   :  { %v282_v26 = vmax.f32 %v278_v22, 0.0  ;;  %v283_v29 = vmax.f32 %v279_v24, 0.0 }
  0xf0   :  { %v198_v25 = vpop.f32.mrb[0].mxu0  ;;  %v222_v10 = vpop.f32.mrb[0].mxu1 }
  0xf1   :  { %v284_v4 = vmul.f32 %v280_v21, %v198_v25  ;;  %v200_v9 = vpop.f32.mrb[1].mxu0  ;;  %v320_v27 = vmul.f32 %v280_v21, %v222_v10  ;;  %v224_v28 = vpop.f32.mrb[1].mxu1 }
  0xf2   :  { %v285_v30 = vmul.f32 %v281_v23, %v200_v9  ;;  %v321_v31 = vmul.f32 %v281_v23, %v224_v28 }
  0xf4   :  { %v204_v32 = vpop.f32.mrb[2].mxu0  ;;  %v228_v33 = vpop.f32.mrb[2].mxu1 }
  0xf5   :  { %v286_v34 = vmul.f32 %v282_v26, %v204_v32  ;;  %v322_v35 = vmul.f32 %v282_v26, %v228_v33  ;;  %v206_v36 = vpop.f32.mrb[3].mxu0  ;;  %v230_v37 = vpop.f32.mrb[3].mxu1 }
  0xf6   :  { %v287_v38 = vmul.f32 %v283_v29, %v206_v36  ;;  %v323_v39 = vmul.f32 %v283_v29, %v230_v37 }
  0xf7   :  { %v288_v40 = vadd.f32 %v286_v34, %v284_v4  ;;  %v324_v41 = vadd.f32 %v322_v35, %v320_v27 }
  0xf8   :  { %v295_v42 = vadd.f32 %v287_v38, %v285_v30  ;;  %v331_v43 = vadd.f32 %v323_v39, %v321_v31  ;;  %v210_v44 = vpop.f32.mrb[4].mxu0  ;;  %v234_v45 = vpop.f32.mrb[4].mxu1 }
  0xf9   :  { %v289_v46 = vrot.slane %v288_v40, 4  ;;  %v325_v47 = vrot.slane %v324_v41, 4  ;;  %v302_v48 = vmul.f32 %v280_v21, %v210_v44  ;;  %v338_v49 = vmul.f32 %v280_v21, %v234_v45  ;;  %v212_v50 = vpop.f32.mrb[5].mxu0  ;;  %v236_v51 = vpop.f32.mrb[5].mxu1 }
  0xfa   :  { %v296_v52 = vrot.slane %v295_v42, 4  ;;  %v332_v53 = vrot.slane %v331_v43, 4  ;;  %v303_v54 = vmul.f32 %v281_v23, %v212_v50  ;;  %v339_v55 = vmul.f32 %v281_v23, %v236_v51 }
  0xfb   :  { %v290_v56 = vadd.f32 %v289_v46, %v288_v40  ;;  %v326_v57 = vadd.f32 %v325_v47, %v324_v41 }
  0xfc   :  { %v297_v58 = vadd.f32 %v296_v52, %v295_v42  ;;  %v216_v59 = vpop.f32.mrb[6].mxu0  ;;  %v240_v60 = vpop.f32.mrb[6].mxu1  ;;  %v333_v61 = vadd.f32 %v332_v53, %v331_v43 }
  0xfd   :  { %v304_v62 = vmul.f32 %v282_v26, %v216_v59  ;;  %v340_v63 = vmul.f32 %v282_v26, %v240_v60  ;;  %v218_v0 = vpop.f32.mrb[7].mxu0  ;;  %v242_v1 = vpop.f32.mrb[7].mxu1  ;;  %v291_v6 = vrot.slane %v290_v56, 2  ;;  %v327_v11 = vrot.slane %v326_v57, 2 }
  0xfe   :  { %v305_v3 = vmul.f32 %v283_v29, %v218_v0  ;;  %v341_v5 = vmul.f32 %v283_v29, %v242_v1  ;;  %v298_v12 = vrot.slane %v297_v58, 2  ;;  %v334_v14 = vrot.slane %v333_v61, 2 }
  0xff   :  { %v306_v7 = vadd.f32 %v304_v62, %v302_v48  ;;  %v342_v8 = vadd.f32 %v340_v63, %v338_v49  ;;  %v292_v19 = vadd.f32 %v291_v6, %v290_v56  ;;  %v328_v22 = vadd.f32 %v327_v11, %v326_v57 }
 0x100   :  { %v313_v2 = vadd.f32 %v305_v3, %v303_v54  ;;  %v349_v13 = vadd.f32 %v341_v5, %v339_v55  ;;  %v299_v23 = vadd.f32 %v298_v12, %v297_v58  ;;  %v335_v10 = vadd.f32 %v334_v14, %v333_v61 }
 0x101   :  { %v307_v15 = vrot.slane %v306_v7, 4  ;;  %v343_v16 = vrot.slane %v342_v8, 4  ;;  %v293_v28 = vrot.slane %v292_v19, 1  ;;  %v329_v31 = vrot.slane %v328_v22, 1 }
 0x102   :  { %v314_v17 = vrot.slane %v313_v2, 4  ;;  %v350_v18 = vrot.slane %v349_v13, 4  ;;  %v300_v32 = vrot.slane %v299_v23, 1  ;;  %v336_v35 = vrot.slane %v335_v10, 1 }
 0x103   :  { %v308_v20 = vadd.f32 %v307_v15, %v306_v7  ;;  %v344_v21 = vadd.f32 %v343_v16, %v342_v8  ;;  %v294_v40 = vadd.f32 %v293_v28, %v292_v19  ;;  %v330_v42 = vadd.f32 %v329_v31, %v328_v22 }
 0x104   :  { %v315_v24 = vadd.f32 %v314_v17, %v313_v2  ;;  %v351_v25 = vadd.f32 %v350_v18, %v349_v13  ;;  %v301_v43 = vadd.f32 %v300_v32, %v299_v23  ;;  %v337_v45 = vadd.f32 %v336_v35, %v335_v10 }
 0x105   :  { %v309_v26 = vrot.slane %v308_v20, 2  ;;  %v345_v4 = vrot.slane %v344_v21, 2 }
 0x106   :  { %v316_v9 = vrot.slane %v315_v24, 2  ;;  %v352_v27 = vrot.slane %v351_v25, 2 }
 0x107   :  { %v310_v29 = vadd.f32 %v309_v26, %v308_v20  ;;  %v346_v30 = vadd.f32 %v345_v4, %v344_v21 }
 0x108   :  { %v317_v33 = vadd.f32 %v316_v9, %v315_v24  ;;  %v353_v34 = vadd.f32 %v352_v27, %v351_v25 }
 0x109   :  { %v311_v36 = vrot.slane %v310_v29, 1  ;;  %v347_v37 = vrot.slane %v346_v30, 1 }
 0x10a   :  { %v318_v38 = vrot.slane %v317_v33, 1  ;;  %v354_v39 = vrot.slane %v353_v34, 1 }
 0x10b   :  { %v312_v41 = vadd.f32 %v311_v36, %v310_v29  ;;  %v348_v46 = vadd.f32 %v347_v37, %v346_v30 }
 0x10c   :  { %v319_v44 = vadd.f32 %v318_v38, %v317_v33  ;;  %v355_v48 = vadd.f32 %v354_v39, %v353_v34 }
 0x10d   :  { %v357_v47 = vsel %vm356_vm1, %v294_v40, %v312_v41 }
 0x10e   :  { %v358_v49 = vsel %vm356_vm1, %v301_v43, %v319_v44  ;;  %v360_v50 = vsel %vm359_vm2, %v357_v47, %v330_v42 }
 0x10f   :  { %v361_v51 = vsel %vm359_vm2, %v358_v49, %v337_v45  ;;  %v363_v52 = vsel %vm362_vm3, %v360_v50, %v348_v46 }
 0x110   :  { %v364_v53 = vsel %vm362_vm3, %v361_v51, %v355_v48 }
 0x111   :  { %v367_v54 = vcombine.low %v363_v52, %v364_v53 }
 0x113   :  { %369 = vst [vmem:[#allocation4] sm:$0xff] %v367_v54 }
 0x114   :  { %430 = shalt.err (!%p427_p5)
}
 0x115   :  { %s431_s11 = scalar_lea.hbm %s547_s4, 128 }
 0x116   :  { %p432_p6 = scmp.ne.s32.totalorder %s547_s4, %s431_s11  ;;  %p435_p7 = scmp.lt.u32.totalorder %s431_s11, %s547_s4 }
 0x118   :  { %p437_p8 = pnand %p435_p7, %p432_p6 }
 0x11a   :  { %440 = shalt.err (!%p437_p8)
}
 0x11b   :  { %379 = dma.vmem_to_hbm [thread:$0]  %s377_s7, 128, %s547_s4, [#allocation5]  }
 0x11c   :  { %441 = dma.done.wait [#allocation5], 128  }
 0x11d   :  { %442 = vsyncadd [#allocation5], 4294967168 }
 0x11e   :  { %383 = vsyncpa [#allocation5], 1 }

</bundles_post_ra>
